<compile_context>
chip_gen: v6e
topology: v6e:2x2x1
jax: 0.10.0
libtpu: 0.0.40
codegen_flags: <defaults>
</compile_context>

<pallas_src>
import functools

import jax
import jax.numpy as jnp
from jax.experimental import pallas as pl
from jax.experimental.pallas import tpu as pltpu

_LANES = 128
_SQRT_HALF = 0.7071067811865476  # 1 / sqrt(2)
_TARGET_BLOCK_BYTES = 1 << 20    # ~1 MiB per block per array
_MIN_GRID_STEPS = 2              # v7x: 2 TensorCores; also enables double-buffering

# Abramowitz & Stegun 7.1.26 coefficients (|erf err| <= 1.5e-7).
_A1 = 0.254829592
_A2 = -0.284496736
_A3 = 1.421413741
_A4 = -1.453152027
_A5 = 1.061405429
_P = 0.3275911


def gelu_kernel(x_ref, o_ref):
    x = x_ref[...].astype(jnp.float32)
    ax = jnp.abs(x)
    az = ax * _SQRT_HALF                          # |x| / sqrt(2)
    # erf(az) = 1 - poly(t) * exp(-az^2),  t = 1 / (1 + p*az)   (A&S 7.1.26)
    den = 1.0 + _P * az
    t = pl.reciprocal(den, approx=True)           # EUP slot (free vs VALU)
    t = t * (2.0 - den * t)                       # one Newton step -> ~2^-24 rel err
    poly = ((((_A5 * t + _A4) * t + _A3) * t + _A2) * t + _A1) * t
    erf_az = 1.0 - poly * jnp.exp(-az * az)       # exp on EUP
    # x * erf(x/sqrt2) == |x| * erf(|x|/sqrt2): no sign / select needed.
    y = 0.5 * (x + ax * erf_az)
    o_ref[...] = y.astype(o_ref.dtype)


def _pick_row_tile(rows, itemsize, row_tile):
    """Pick a sublane tile: ~1 MiB blocks, granule-aligned, >=2 grid steps."""
    granule = max(8, 32 // itemsize)              # packed-sublane granule per dtype
    if row_tile is None:
        row_tile = max(granule, _TARGET_BLOCK_BYTES // (_LANES * itemsize))
    row_tile = max(granule, (int(row_tile) // granule) * granule)

    if rows < 2 * granule:
        # Tiny input: single full-extent block (legal even when rows % 8 != 0).
        return rows

    # Guarantee a multi-step grid so the parallel axis can use both v7x
    # TensorCores and DMA/compute overlap kicks in.
    if pl.cdiv(rows, row_tile) < _MIN_GRID_STEPS:
        row_tile = pl.cdiv(pl.cdiv(rows, _MIN_GRID_STEPS), granule) * granule
    return row_tile


@functools.partial(jax.jit, static_argnames=("row_tile",))
def gelu(x, row_tile=None):
    """GeLU applied elementwise to an array of any shape/dtype (compute in f32)."""
    orig_shape = x.shape
    total = x.size
    if total == 0:
        return x
    itemsize = jnp.dtype(x.dtype).itemsize

    flat = x.reshape(-1)
    if total % _LANES == 0:
        # Fast path: zero-copy reshape to a lane-dense [rows, 128] slab.
        rows = total // _LANES
        padded = False
    else:
        # Slow path (rare): pad only up to the next multiple of 128 lanes.
        rows = pl.cdiv(total, _LANES)
        flat = jnp.pad(flat, (0, rows * _LANES - total))
        padded = True
    x2d = flat.reshape(rows, _LANES)

    tile = _pick_row_tile(rows, itemsize, row_tile)
    grid = (pl.cdiv(rows, tile),)                 # partial last block is fine

    out2d = pl.pallas_call(
        gelu_kernel,
        out_shape=jax.ShapeDtypeStruct((rows, _LANES), x.dtype),
        grid_spec=pltpu.PrefetchScalarGridSpec(
            num_scalar_prefetch=0,
            grid=grid,
            in_specs=[pl.BlockSpec((tile, _LANES), lambda i: (i, 0))],
            out_specs=pl.BlockSpec((tile, _LANES), lambda i: (i, 0)),
        ),
        compiler_params=pltpu.CompilerParams(
            dimension_semantics=("parallel",),
        ),
    )(x2d)

    out = out2d.reshape(-1)
    if padded:
        out = out[:total]
    return out.reshape(orig_shape)


def reference(x):
    # x * 0.5 * (1 + erf(x / sqrt(2)))  -- exact-erf GeLU, matches the PyTorch module.
    return x * 0.5 * (1.0 + jax.scipy.special.erf(x * _SQRT_HALF))


if __name__ == "__main__":
    key = jax.random.PRNGKey(0)
    k1, k2, k3 = jax.random.split(key, 3)

    # Primary small test (batch=2, seq=8, hidden=32): single full-extent block.
    x_small = jax.random.normal(k1, (2, 8, 32), dtype=jnp.float32) * 2.0
    out_small = jax.block_until_ready(gelu(x_small))
    ref_small = reference(x_small)
    assert out_small.shape == x_small.shape
    assert jnp.allclose(out_small, ref_small, atol=1e-5, rtol=1e-5), "small-shape mismatch"

    # Lane-aligned (zero-copy fast path), multi-step grid with a partial last block.
    x_big = jax.random.normal(k2, (4, 128, 130), dtype=jnp.float32) * 3.0
    out_big = jax.block_until_ready(gelu(x_big))
    ref_big = reference(x_big)
    assert out_big.shape == x_big.shape
    assert jnp.allclose(out_big, ref_big, atol=1e-5, rtol=1e-5), "aligned-shape mismatch"

    # Non-lane-aligned total: exercises the pad/slice slow path.
    x_odd = jax.random.normal(k3, (3, 7, 11), dtype=jnp.float32) * 2.5
    out_odd = jax.block_until_ready(gelu(x_odd))
    ref_odd = reference(x_odd)
    assert out_odd.shape == x_odd.shape
    assert jnp.allclose(out_odd, ref_odd, atol=1e-5, rtol=1e-5), "padded-shape mismatch"

    print("KERNEL_OK")
</pallas_src>

<mosaic_0001>
module attributes {stable_mosaic.version = 11 : i64} {
  func.func @gelu_kernel(%arg0: i32, %arg1: memref<4x128xf32, #tpu.memory_space<vmem>>, %arg2: memref<4x128xf32, #tpu.memory_space<vmem>>) attributes {dimension_semantics = [#tpu.dimension_semantics<parallel>], iteration_bounds = array<i64: 1>, scalar_prefetch = 0 : i64, scratch_operands = 0 : i64, tpu.core_type = #tpu.core_type<tc>, window_params = [{transform_indices = @transform_0, window_bounds = array<i64: 4, 128>}, {transform_indices = @transform_1, window_bounds = array<i64: 4, 128>}]} {
    %c0 = arith.constant 0 : index
    %c0_0 = arith.constant 0 : index
    %0 = vector.load %arg1[%c0, %c0_0] : memref<4x128xf32, #tpu.memory_space<vmem>>, vector<4x128xf32>
    %1 = math.absf %0 : vector<4x128xf32>
    %cst = arith.constant 0.707106769 : f32
    %2 = vector.broadcast %cst : f32 to vector<4x128xf32>
    %3 = arith.mulf %1, %2 : vector<4x128xf32>
    %cst_1 = arith.constant 0.327591091 : f32
    %4 = vector.broadcast %cst_1 : f32 to vector<4x128xf32>
    %5 = arith.mulf %4, %3 : vector<4x128xf32>
    %cst_2 = arith.constant 1.000000e+00 : f32
    %6 = vector.broadcast %cst_2 : f32 to vector<4x128xf32>
    %7 = arith.addf %6, %5 : vector<4x128xf32>
    %8 = tpu.reciprocal %7 {approx = true} : vector<4x128xf32> -> vector<4x128xf32>
    %9 = arith.mulf %7, %8 : vector<4x128xf32>
    %cst_3 = arith.constant 2.000000e+00 : f32
    %10 = vector.broadcast %cst_3 : f32 to vector<4x128xf32>
    %11 = arith.subf %10, %9 : vector<4x128xf32>
    %12 = arith.mulf %8, %11 : vector<4x128xf32>
    %cst_4 = arith.constant 1.06140542 : f32
    %13 = vector.broadcast %cst_4 : f32 to vector<4x128xf32>
    %14 = arith.mulf %13, %12 : vector<4x128xf32>
    %cst_5 = arith.constant -1.45315206 : f32
    %15 = vector.broadcast %cst_5 : f32 to vector<4x128xf32>
    %16 = arith.addf %14, %15 : vector<4x128xf32>
    %17 = arith.mulf %16, %12 : vector<4x128xf32>
    %cst_6 = arith.constant 1.42141378 : f32
    %18 = vector.broadcast %cst_6 : f32 to vector<4x128xf32>
    %19 = arith.addf %17, %18 : vector<4x128xf32>
    %20 = arith.mulf %19, %12 : vector<4x128xf32>
    %cst_7 = arith.constant -0.284496725 : f32
    %21 = vector.broadcast %cst_7 : f32 to vector<4x128xf32>
    %22 = arith.addf %20, %21 : vector<4x128xf32>
    %23 = arith.mulf %22, %12 : vector<4x128xf32>
    %cst_8 = arith.constant 0.254829586 : f32
    %24 = vector.broadcast %cst_8 : f32 to vector<4x128xf32>
    %25 = arith.addf %23, %24 : vector<4x128xf32>
    %26 = arith.mulf %25, %12 : vector<4x128xf32>
    %cst_9 = arith.constant 0.000000e+00 : f32
    %27 = vector.broadcast %cst_9 : f32 to vector<4x128xf32>
    %28 = arith.subf %27, %3 : vector<4x128xf32>
    %29 = arith.mulf %28, %3 : vector<4x128xf32>
    %30 = math.exp %29 : vector<4x128xf32>
    %31 = arith.mulf %26, %30 : vector<4x128xf32>
    %cst_10 = arith.constant 1.000000e+00 : f32
    %32 = vector.broadcast %cst_10 : f32 to vector<4x128xf32>
    %33 = arith.subf %32, %31 : vector<4x128xf32>
    %34 = arith.mulf %1, %33 : vector<4x128xf32>
    %35 = arith.addf %0, %34 : vector<4x128xf32>
    %cst_11 = arith.constant 5.000000e-01 : f32
    %36 = vector.broadcast %cst_11 : f32 to vector<4x128xf32>
    %37 = arith.mulf %36, %35 : vector<4x128xf32>
    %c0_12 = arith.constant 0 : index
    %c0_13 = arith.constant 0 : index
    %38 = vector.load %arg2[%c0_12, %c0_13] : memref<4x128xf32, #tpu.memory_space<vmem>>, vector<4x128xf32>
    tpu.vector_store %arg2[%c0_12, %c0_13], %37 {strides = array<i32>} : memref<4x128xf32, #tpu.memory_space<vmem>>, vector<4x128xf32>,
    return
  }
  func.func @transform_0(%arg0: i32) -> (i32, i32) {
    %c0_i32 = arith.constant 0 : i32
    %c0_i32_0 = arith.constant 0 : i32
    return %arg0, %c0_i32 : i32, i32
  }
  func.func @transform_1(%arg0: i32) -> (i32, i32) {
    %c0_i32 = arith.constant 0 : i32
    %c0_i32_0 = arith.constant 0 : i32
    return %arg0, %c0_i32 : i32, i32
  }
}

</mosaic_0001>

<bundles_post_ra>
// kernel: gelu.1
= control target key start
LH: loop header
LB: loop body
LE: loop exit
PB: predicated region body
PF: predicated region fallthrough
CT: control target
= control target key end

     0   :  { %s60_s0 = inlined_call_operand.vmem [shape: f32[4,128], index: 0, kind: input, shape index: {}]   ;;  %s61_s1 = inlined_call_operand.vmem [shape: f32[4,128], index: 1, kind: output, shape index: {}]  }
   0x1   :  { %v8_v0 = vld [vmem:[%s60_s0] sm:$0xf] }
   0x2   :  { %v9_v1 = vand.u32 2147483647, %v8_v0 }
   0x4   :  { %v10_v2 = vmul.f32 0.70710677, %v9_v1 }
   0x6   :  { %v11_v3 = vmul.f32 0.3275911, %v10_v2  ;;  %v26_v5 = vsub.f32 0.0, %v10_v2 }
   0x8   :  { %v12_v4 = vadd.f32 1.0, %v11_v3  ;;  %v27_v8 = vmul.f32 %v26_v5, %v10_v2 }
   0xa   :  { %40 = vrcp.f32 %v12_v4  ;;  %v28_v11 = vmul.f32 1.442695, %v27_v8 }
   0xc   :  { %42 = vpow2.f32 %v28_v11 }
  0x17   :  { %v41_v6 = vpop.eup %40 }
  0x18   :  { %v14_v7 = vmul.f32 %v41_v6, %v12_v4 }
  0x19   :  { %v43_v20 = vpop.eup %42 }
  0x1a   :  { %v15_v9 = vsub.f32 2.0, %v14_v7 }
  0x1c   :  { %v16_v10 = vmul.f32 %v41_v6, %v15_v9 }
  0x1e   :  { %v17_v12 = vmul.f32 1.0614054, %v16_v10 }
  0x20   :  { %v18_v13 = vadd.f32 -1.4531521, %v17_v12 }
  0x22   :  { %v19_v14 = vmul.f32 %v18_v13, %v16_v10 }
  0x24   :  { %v20_v15 = vadd.f32 1.4214138, %v19_v14 }
  0x26   :  { %v21_v16 = vmul.f32 %v20_v15, %v16_v10 }
  0x28   :  { %v22_v17 = vadd.f32 -0.28449672, %v21_v16 }
  0x2a   :  { %v23_v18 = vmul.f32 %v22_v17, %v16_v10 }
  0x2c   :  { %v24_v19 = vadd.f32 0.2548296, %v23_v18 }
  0x2e   :  { %v25_v21 = vmul.f32 %v24_v19, %v16_v10 }
  0x30   :  { %v30_v22 = vmul.f32 %v43_v20, %v25_v21 }
  0x32   :  { %v31_v23 = vsub.f32 1.0, %v30_v22 }
  0x34   :  { %v32_v24 = vmul.f32 %v31_v23, %v9_v1 }
  0x36   :  { %v33_v25 = vadd.f32 %v32_v24, %v8_v0 }
  0x38   :  { %v34_v26 = vmul.f32 0.5, %v33_v25 }
  0x3a   :  { %35 = vst [vmem:[%s61_s1] sm:$0xf] %v34_v26 }

</bundles_post_ra>
